<compile_context>
chip_gen: v6e
topology: v6e:2x2x1
jax: 0.10.0
libtpu: 0.0.40
codegen_flags: <defaults>
</compile_context>

<pallas_src>
import functools
import math

import jax
import jax.numpy as jnp
from jax.experimental import pallas as pl
from jax.experimental.pallas import tpu as pltpu

LEAKY_SLOPE = 0.01  # nn.LeakyReLU default negative_slope


def mlp_kernel(x_ref, w1_ref, b1_ref, w2_ref, b2_ref, o_ref):
    # x_ref: (TM, Din)  w1: (Din, H)  b1: (1, H)  w2: (H, Dout)  b2: (1, Dout)
    x = x_ref[...].astype(jnp.float32)

    # fc1 + LeakyReLU (dropout p=0 -> identity)
    h = jnp.dot(x, w1_ref[...], preferred_element_type=jnp.float32) + b1_ref[...]
    h = jnp.where(h >= 0, h, LEAKY_SLOPE * h)

    # fc2 (dropout p=0 -> identity)
    out = jnp.dot(h, w2_ref[...], preferred_element_type=jnp.float32) + b2_ref[...]

    o_ref[...] = out.astype(o_ref.dtype)


def _ceil_to(x, m):
    return ((x + m - 1) // m) * m


def mlp_forward(x, params, *, block_rows=1024):
    """x: (..., Din) float32. Returns (..., Dout).

    All leading dims are flattened to one row axis; the grid iterates over
    row blocks of up to `block_rows` rows (multiple of 8 sublanes). On v7x,
    pass block_rows ~= total_rows // 2 (rounded to 256) so the "parallel"
    grid axis has >= 2 steps for the two TensorCores; on v5e/v6e (1 TC) the
    fewest, largest steps that fit VMEM are best.
    """
    w1, b1, w2, b2 = params["w1"], params["b1"], params["w2"], params["b2"]
    Din, H = w1.shape
    Dout = w2.shape[1]

    orig_lead = x.shape[:-1]
    R = math.prod(orig_lead) if orig_lead else 1
    x2 = x.reshape(R, Din)  # contiguous row-major: free reshape, no copy

    # Row tile: as large as block_rows allows, multiple of 8 (sublane rule);
    # no padding of x — the ragged last block is masked by Pallas.
    if R >= 8:
        tm = min(_ceil_to(max(block_rows, 8), 8), _ceil_to(R, 8))
    else:
        tm = R  # block equals full array dim (allowed)
    grid = (pl.cdiv(R, tm),)

    def const_spec(arr):
        nd = arr.ndim
        return pl.BlockSpec(arr.shape, lambda i, _n=nd: (0,) * _n)

    cost = pl.CostEstimate(
        flops=2 * R * (Din * H + H * Dout),
        transcendentals=0,
        bytes_accessed=4 * (R * Din + R * Dout + Din * H + H * Dout + H + Dout),
    )

    out = pl.pallas_call(
        mlp_kernel,
        out_shape=jax.ShapeDtypeStruct((R, Dout), x.dtype),
        grid_spec=pltpu.PrefetchScalarGridSpec(
            num_scalar_prefetch=0,
            grid=grid,
            in_specs=[
                pl.BlockSpec((tm, Din), lambda i: (i, 0)),
                const_spec(w1), const_spec(b1),
                const_spec(w2), const_spec(b2),
            ],
            out_specs=pl.BlockSpec((tm, Dout), lambda i: (i, 0)),
        ),
        compiler_params=pltpu.CompilerParams(
            dimension_semantics=("parallel",),   # shards row blocks across TCs (v7x)
            vmem_limit_bytes=32 << 20,           # explicit; safe on v5e/v6e/v7x
        ),
        cost_estimate=cost,
    )(x2, w1, b1, w2, b2)

    return out.reshape(*orig_lead, Dout)


def init_params(key, input_dim, hidden_dim, out_dim):
    """Synthetic params matching nn.Linear init; weights pre-transposed to
    (in_features, out_features) so the kernel does x @ W directly."""
    ks = jax.random.split(key, 4)

    def lin_w(k, fan_in, fan_out):
        bound = 1.0 / jnp.sqrt(fan_in)
        return jax.random.uniform(k, (fan_in, fan_out), jnp.float32, -bound, bound)

    def lin_b(k, fan_in, fan_out):
        bound = 1.0 / jnp.sqrt(fan_in)
        return jax.random.uniform(k, (1, fan_out), jnp.float32, -bound, bound)

    return {
        "w1": lin_w(ks[0], input_dim, hidden_dim),
        "b1": lin_b(ks[1], input_dim, hidden_dim),
        "w2": lin_w(ks[2], hidden_dim, out_dim),
        "b2": lin_b(ks[3], hidden_dim, out_dim),
    }


def reference_forward(x, params):
    """Pure-JAX reference mirroring the PyTorch Mlp (dropout p=0)."""
    h = x @ params["w1"] + params["b1"][0]
    h = jnp.where(h >= 0, h, LEAKY_SLOPE * h)
    return h @ params["w2"] + params["b2"][0]


if __name__ == "__main__":
    # Small shapes consistent with how Mlp is used inside the transformer:
    # tokens of dim 32, hidden 64, out 32; (N, L) leading dims.
    N, L = 16, 16
    input_dim, hidden_dim, out_dim = 32, 64, 32

    key = jax.random.PRNGKey(0)
    kx, kp = jax.random.split(key)
    x = jax.random.normal(kx, (N, L, input_dim), jnp.float32)
    params = init_params(kp, input_dim, hidden_dim, out_dim)

    fwd = jax.jit(functools.partial(mlp_forward, block_rows=1024))
    out = jax.block_until_ready(fwd(x, params))

    ref = reference_forward(x, params)
    assert out.shape == (N, L, out_dim)
    assert jnp.allclose(out, ref, atol=1e-4, rtol=1e-4), (
        float(jnp.max(jnp.abs(out - ref))))

    # Ragged case: row count not a multiple of the tile -> exercises the
    # pad-free masked last-block path.
    x_odd = jax.random.normal(jax.random.PRNGKey(1), (5, 7, input_dim), jnp.float32)
    out_odd = jax.block_until_ready(jax.jit(mlp_forward)(x_odd, params))
    ref_odd = reference_forward(x_odd, params)
    assert out_odd.shape == (5, 7, out_dim)
    assert jnp.allclose(out_odd, ref_odd, atol=1e-4, rtol=1e-4), (
        float(jnp.max(jnp.abs(out_odd - ref_odd))))

    print("KERNEL_OK")
</pallas_src>

<mosaic_0001>
module attributes {stable_mosaic.version = 11 : i64} {
  func.func @mlp_kernel(%arg0: i32, %arg1: memref<256x32xf32, #tpu.memory_space<vmem>>, %arg2: memref<32x64xf32, #tpu.memory_space<vmem>>, %arg3: memref<1x64xf32, #tpu.memory_space<vmem>>, %arg4: memref<64x32xf32, #tpu.memory_space<vmem>>, %arg5: memref<1x32xf32, #tpu.memory_space<vmem>>, %arg6: memref<256x32xf32, #tpu.memory_space<vmem>>) attributes {dimension_semantics = [#tpu.dimension_semantics<parallel>], iteration_bounds = array<i64: 1>, scalar_prefetch = 0 : i64, scratch_operands = 0 : i64, tpu.core_type = #tpu.core_type<tc>, window_params = [{transform_indices = @transform_0, window_bounds = array<i64: 256, 32>}, {pipeline_mode = #tpu.pipeline_mode<synchronous>, transform_indices = @transform_1, window_bounds = array<i64: 32, 64>}, {pipeline_mode = #tpu.pipeline_mode<synchronous>, transform_indices = @transform_2, window_bounds = array<i64: 1, 64>}, {pipeline_mode = #tpu.pipeline_mode<synchronous>, transform_indices = @transform_3, window_bounds = array<i64: 64, 32>}, {pipeline_mode = #tpu.pipeline_mode<synchronous>, transform_indices = @transform_4, window_bounds = array<i64: 1, 32>}, {transform_indices = @transform_5, window_bounds = array<i64: 256, 32>}]} {
    %c0 = arith.constant 0 : index
    %c0_0 = arith.constant 0 : index
    %0 = vector.load %arg1[%c0, %c0_0] : memref<256x32xf32, #tpu.memory_space<vmem>>, vector<256x32xf32>
    %c0_1 = arith.constant 0 : index
    %c0_2 = arith.constant 0 : index
    %1 = vector.load %arg2[%c0_1, %c0_2] : memref<32x64xf32, #tpu.memory_space<vmem>>, vector<32x64xf32>
    %cst = arith.constant dense<0.000000e+00> : vector<256x64xf32>
    %2 = tpu.matmul %0, %1, %cst {dimension_numbers = #tpu.dot_dimension_numbers<[1], [0], [0], [1], [0, 0, 1, 1], [], []>} : vector<256x32xf32>, vector<32x64xf32>, vector<256x64xf32> -> vector<256x64xf32>
    %c0_3 = arith.constant 0 : index
    %c0_4 = arith.constant 0 : index
    %3 = vector.load %arg3[%c0_3, %c0_4] : memref<1x64xf32, #tpu.memory_space<vmem>>, vector<1x64xf32>
    %4 = vector.broadcast %3 : vector<1x64xf32> to vector<256x64xf32>
    %5 = arith.addf %2, %4 : vector<256x64xf32>
    %cst_5 = arith.constant 0.000000e+00 : f32
    %6 = vector.broadcast %cst_5 : f32 to vector<256x64xf32>
    %7 = arith.cmpf oge, %5, %6 : vector<256x64xf32>
    %cst_6 = arith.constant 0.00999999977 : f32
    %8 = vector.broadcast %cst_6 : f32 to vector<256x64xf32>
    %9 = arith.mulf %8, %5 : vector<256x64xf32>
    %10 = arith.select %7, %5, %9 : vector<256x64xi1>, vector<256x64xf32>
    %c0_7 = arith.constant 0 : index
    %c0_8 = arith.constant 0 : index
    %11 = vector.load %arg4[%c0_7, %c0_8] : memref<64x32xf32, #tpu.memory_space<vmem>>, vector<64x32xf32>
    %cst_9 = arith.constant dense<0.000000e+00> : vector<256x32xf32>
    %12 = tpu.matmul %10, %11, %cst_9 {dimension_numbers = #tpu.dot_dimension_numbers<[1], [0], [0], [1], [0, 0, 1, 1], [], []>} : vector<256x64xf32>, vector<64x32xf32>, vector<256x32xf32> -> vector<256x32xf32>
    %c0_10 = arith.constant 0 : index
    %c0_11 = arith.constant 0 : index
    %13 = vector.load %arg5[%c0_10, %c0_11] : memref<1x32xf32, #tpu.memory_space<vmem>>, vector<1x32xf32>
    %14 = vector.broadcast %13 : vector<1x32xf32> to vector<256x32xf32>
    %15 = arith.addf %12, %14 : vector<256x32xf32>
    %c0_12 = arith.constant 0 : index
    %c0_13 = arith.constant 0 : index
    %16 = vector.load %arg6[%c0_12, %c0_13] : memref<256x32xf32, #tpu.memory_space<vmem>>, vector<256x32xf32>
    tpu.vector_store %arg6[%c0_12, %c0_13], %15 {strides = array<i32>} : memref<256x32xf32, #tpu.memory_space<vmem>>, vector<256x32xf32>,
    return
  }
  func.func @transform_0(%arg0: i32) -> (i32, i32) {
    %c0_i32 = arith.constant 0 : i32
    %c0_i32_0 = arith.constant 0 : i32
    return %arg0, %c0_i32 : i32, i32
  }
  func.func @transform_1(%arg0: i32) -> (i32, i32) {
    %c0_i32 = arith.constant 0 : i32
    %c0_i32_0 = arith.constant 0 : i32
    %c0_i32_1 = arith.constant 0 : i32
    return %c0_i32, %c0_i32_0 : i32, i32
  }
  func.func @transform_2(%arg0: i32) -> (i32, i32) {
    %c0_i32 = arith.constant 0 : i32
    %c0_i32_0 = arith.constant 0 : i32
    %c0_i32_1 = arith.constant 0 : i32
    return %c0_i32, %c0_i32_0 : i32, i32
  }
  func.func @transform_3(%arg0: i32) -> (i32, i32) {
    %c0_i32 = arith.constant 0 : i32
    %c0_i32_0 = arith.constant 0 : i32
    %c0_i32_1 = arith.constant 0 : i32
    return %c0_i32, %c0_i32_0 : i32, i32
  }
  func.func @transform_4(%arg0: i32) -> (i32, i32) {
    %c0_i32 = arith.constant 0 : i32
    %c0_i32_0 = arith.constant 0 : i32
    %c0_i32_1 = arith.constant 0 : i32
    return %c0_i32, %c0_i32_0 : i32, i32
  }
  func.func @transform_5(%arg0: i32) -> (i32, i32) {
    %c0_i32 = arith.constant 0 : i32
    %c0_i32_0 = arith.constant 0 : i32
    return %arg0, %c0_i32 : i32, i32
  }
}

</mosaic_0001>

<bundles_post_ra>
// kernel: mlp_forward.1
= control target key start
LH: loop header
LB: loop body
LE: loop exit
PB: predicated region body
PF: predicated region fallthrough
CT: control target
= control target key end

     0   :  { %10 = vsyncpa [#allocation3], 0  ;;  %s1460_s0 = inlined_call_operand.hbm [shape: f32[256,32], index: 0, kind: input, shape index: {}]   ;;  %s1461_s1 = inlined_call_operand.vmem [shape: f32[32,64], index: 1, kind: input, shape index: {}]   ;;  %s1462_s2 = inlined_call_operand.vmem [shape: f32[1,64], index: 2, kind: input, shape index: {}]   ;;  %s1463_s3 = inlined_call_operand.vmem [shape: f32[64,32], index: 3, kind: input, shape index: {}]   ;;  %s1464_s4 = inlined_call_operand.vmem [shape: f32[1,32], index: 4, kind: input, shape index: {}]   ;;  %s1465_s5 = inlined_call_operand.hbm [shape: f32[256,32], index: 5, kind: output, shape index: {}]  }
   0x1   :  { %11 = vsyncpa [#allocation4], 0  ;;  %s1208_s18 = smov [#allocation2]  }
   0x2   :  { %s17_s19 = sshll.u32 %s1208_s18, 4  ;;  %s18_s19 = int_to_ptr.vmem [resolvable:$true] %s17_s19 }
   0x3   :  { %s1172_s20 = scalar_lea.vmem %s18_s19, 4096  ;;  %p1177_p1 = scmp.lt.s32.totalorder %s18_s19, %s18_s19 }
   0x4   :  { %p1173_p0 = scmp.ne.s32.totalorder %s18_s19, %s1172_s20  ;;  %p1178_p2 = scmp.lt.s32.totalorder %s1172_s20, %s1172_s20 }
   0x6   :  { %p1179_p3 = por %p1178_p2, %p1177_p1 }
   0x8   :  { %p1180_p4 = pnand %p1179_p3, %p1173_p0 }
   0xa   :  { %1183 = shalt.err (!%p1180_p4)
}
   0xb   :  { %s1209_s21 = smov 128   ;;  %s1210_s22 = smov 8  }
   0xc   :  { %23 = dma.hbm_to_vmem [thread:$0]  %s1460_s0, 4096, %s18_s19, [#allocation3], %s1209_s21, %s1209_s21, %s1210_s22  }
   0xd   :  { %1204 = dma.done.wait [#allocation3], 4096  }
   0xe   :  { %1205 = vsyncadd [#allocation3], 4294963200  ;;  %vm78_vm0 = vcmask 261120   ;;  %v70_v0 = vld [vmem:[%s1461_s1 + $0x18] sm:$0xff]  ;;  %v69_v1 = vld [vmem:[%s1461_s1 + $0x10] sm:$0xff]  ;;  %vm511_vm1 = vcmask 523264  }
   0xf   :  { %1024 = vmatprep.subr.mxu0 %v70_v0  ;;  %v35_v2 = vld [vmem:[#allocation2] sm:$0xff]  ;;  %v68_v3 = vld [vmem:[%s1461_s1 + $0x8] sm:$0xff]  ;;  %v37_v6 = vld [vmem:[#allocation2 + $0x10] sm:$0xff] }
  0x10   :  { %1025 = vmatpush3.msra.mxu0 %v70_v0  ;;  %1032 = vmatprep.mubr.msk.f32.mxu0 %vm78_vm0, %v35_v2  ;;  %v67_v4 = vld [vmem:[%s1461_s1] sm:$0xff]  ;;  %v36_v5 = vld [vmem:[#allocation2 + $0x8] sm:$0xff]  ;;  %v38_v7 = vld [vmem:[#allocation2 + $0x18] sm:$0xff] }
  0x11   :  { %1026 = vmatprep.subr.mxu0 %v69_v1  ;;  %v39_v8 = vld [vmem:[#allocation2 + $0x20] sm:$0xff]  ;;  %v503_v9 = vld [vmem:[%s1463_s3 + $0x38] sm:$0xff]  ;;  %v502_v10 = vld [vmem:[%s1463_s3 + $0x30] sm:$0xff] }
  0x12   :  { %1027 = vmatpush3.msra.mxu0 %v69_v1  ;;  %v40_v11 = vld [vmem:[#allocation2 + $0x28] sm:$0xff]  ;;  %v41_v13 = vld [vmem:[#allocation2 + $0x30] sm:$0xff]  ;;  %1144 = vmatprep.subr.mxu1 %v503_v9  ;;  %v500_v14 = vld [vmem:[%s1463_s3 + $0x20] sm:$0xff] }
  0x13   :  { %1028 = vmatprep.subr.mxu0 %v68_v3  ;;  %v501_v12 = vld [vmem:[%s1463_s3 + $0x28] sm:$0xff]  ;;  %1152 = vmatpush3.msra.mxu1 %v503_v9  ;;  %v42_v15 = vld [vmem:[#allocation2 + $0x38] sm:$0xff]  ;;  %v43_v16 = vld [vmem:[#allocation2 + $0x40] sm:$0xff] }
  0x14   :  { %1029 = vmatpush3.msra.mxu0 %v68_v3  ;;  %1145 = vmatprep.subr.mxu1 %v502_v10  ;;  %v44_v17 = vld [vmem:[#allocation2 + $0x48] sm:$0xff]  ;;  %v45_v18 = vld [vmem:[#allocation2 + $0x50] sm:$0xff]  ;;  %v46_v19 = vld [vmem:[#allocation2 + $0x58] sm:$0xff] }
  0x15   :  { %1030 = vmatprep.subr.mxu0 %v67_v4  ;;  %1153 = vmatpush3.msra.mxu1 %v502_v10  ;;  %v47_v20 = vld [vmem:[#allocation2 + $0x60] sm:$0xff]  ;;  %v48_v21 = vld [vmem:[#allocation2 + $0x68] sm:$0xff]  ;;  %v49_v22 = vld [vmem:[#allocation2 + $0x70] sm:$0xff] }
  0x16   :  { %1031 = vmatpush3.msra.mxu0 %v67_v4  ;;  %1146 = vmatprep.subr.mxu1 %v501_v12  ;;  %v50_v23 = vld [vmem:[#allocation2 + $0x78] sm:$0xff]  ;;  %v51_v24 = vld [vmem:[#allocation2 + $0x80] sm:$0xff]  ;;  %v52_v25 = vld [vmem:[#allocation2 + $0x88] sm:$0xff] }
  0x17   :  { %1033 = vmatmul.mubr.msk.f32.vlgmr.msra.gmra.mxu0 %vm78_vm0, %v36_v5  ;;  %1080 = vmatprep.subr.mxu0 %v503_v9  ;;  %v53_v26 = vld [vmem:[#allocation2 + $0x90] sm:$0xff]  ;;  %v54_v27 = vld [vmem:[#allocation2 + $0x98] sm:$0xff]  ;;  %v55_v28 = vld [vmem:[#allocation2 + $0xa0] sm:$0xff] }
  0x18   :  { %1035 = vmatprep.mubr.msk.f32.mxu0 %vm78_vm0, %v37_v6  ;;  %1081 = vmatpush3.msra.mxu0 %v503_v9  ;;  %v56_v29 = vld [vmem:[#allocation2 + $0xa8] sm:$0xff]  ;;  %v57_v30 = vld [vmem:[#allocation2 + $0xb0] sm:$0xff]  ;;  %v58_v31 = vld [vmem:[#allocation2 + $0xb8] sm:$0xff] }
  0x19   :  { %1082 = vmatprep.subr.mxu0 %v502_v10  ;;  %1154 = vmatpush3.msra.mxu1 %v501_v12  ;;  %v59_v32 = vld [vmem:[#allocation2 + $0xc0] sm:$0xff]  ;;  %v60_v33 = vld [vmem:[#allocation2 + $0xc8] sm:$0xff]  ;;  %v61_v34 = vld [vmem:[#allocation2 + $0xd0] sm:$0xff] }
  0x1a   :  { %1083 = vmatpush3.msra.mxu0 %v502_v10  ;;  %1147 = vmatprep.subr.mxu1 %v500_v14  ;;  %v62_v35 = vld [vmem:[#allocation2 + $0xd8] sm:$0xff]  ;;  %v63_v36 = vld [vmem:[#allocation2 + $0xe0] sm:$0xff]  ;;  %v64_v37 = vld [vmem:[#allocation2 + $0xe8] sm:$0xff] }
  0x1b   :  { %1036 = vmatmul.mubr.msk.f32.gmra.mxu0 %vm78_vm0, %v38_v7  ;;  %1084 = vmatprep.subr.mxu0 %v501_v12  ;;  %v65_v38 = vld [vmem:[#allocation2 + $0xf0] sm:$0xff]  ;;  %v66_v39 = vld [vmem:[#allocation2 + $0xf8] sm:$0xff]  ;;  %v497_v42 = vld [vmem:[%s1463_s3 + $0x8] sm:$0xff] }
  0x1c   :  { %1038 = vmatprep.mubr.msk.f32.mxu0 %vm78_vm0, %v39_v8  ;;  %1085 = vmatpush3.msra.mxu0 %v501_v12  ;;  %v499_v40 = vld [vmem:[%s1463_s3 + $0x18] sm:$0xff]  ;;  %v498_v41 = vld [vmem:[%s1463_s3 + $0x10] sm:$0xff]  ;;  %v496_v43 = vld [vmem:[%s1463_s3] sm:$0xff] }
  0x1d   :  { %1086 = vmatprep.subr.mxu0 %v500_v14  ;;  %1155 = vmatpush3.msra.mxu1 %v500_v14  ;;  %v1319_v44 = vld [vmem:[%s1462_s2] ss:$0 sm:$0xff] }
  0x1e   :  { %1087 = vmatpush3.msra.mxu0 %v500_v14  ;;  %1148 = vmatprep.subr.mxu1 %v499_v40 }
  0x1f   :  { %1039 = vmatmul.mubr.msk.f32.gmra.mxu0 %vm78_vm0, %v40_v11  ;;  %1088 = vmatprep.subr.mxu0 %v499_v40 }
  0x20   :  { %1041 = vmatprep.mubr.msk.f32.mxu0 %vm78_vm0, %v41_v13  ;;  %1089 = vmatpush3.msra.mxu0 %v499_v40 }
  0x21   :  { %1156 = vmatpush3.msra.mxu1 %v499_v40  ;;  %1090 = vmatprep.subr.mxu0 %v498_v41 }
  0x22   :  { %1149 = vmatprep.subr.mxu1 %v498_v41  ;;  %1091 = vmatpush3.msra.mxu0 %v498_v41 }
  0x23   :  { %1042 = vmatmul.mubr.msk.f32.gmra.mxu0 %vm78_vm0, %v42_v15  ;;  %1157 = vmatpush3.msra.mxu1 %v498_v41 }
  0x24   :  { %1044 = vmatprep.mubr.msk.f32.mxu0 %vm78_vm0, %v43_v16  ;;  %1092 = vmatprep.subr.mxu0 %v497_v42 }
  0x25   :  { %1150 = vmatprep.subr.mxu1 %v497_v42  ;;  %1093 = vmatpush3.msra.mxu0 %v497_v42 }
  0x26   :  { %1158 = vmatpush3.msra.mxu1 %v497_v42  ;;  %1094 = vmatprep.subr.mxu0 %v496_v43 }
  0x27   :  { %1045 = vmatmul.mubr.msk.f32.gmra.mxu0 %vm78_vm0, %v44_v17  ;;  %1151 = vmatprep.subr.mxu1 %v496_v43 }
  0x28   :  { %1047 = vmatprep.mubr.msk.f32.mxu0 %vm78_vm0, %v45_v18  ;;  %1095 = vmatpush3.msra.mxu0 %v496_v43 }
  0x29   :  { %1159 = vmatpush3.msra.mxu1 %v496_v43 }
  0x2b   :  { %1048 = vmatmul.mubr.msk.f32.gmra.mxu0 %vm78_vm0, %v46_v19 }
  0x2c   :  { %1050 = vmatprep.mubr.msk.f32.mxu0 %vm78_vm0, %v47_v20 }
  0x2f   :  { %1051 = vmatmul.mubr.msk.f32.gmra.mxu0 %vm78_vm0, %v48_v21 }
  0x30   :  { %1053 = vmatprep.mubr.msk.f32.mxu0 %vm78_vm0, %v49_v22 }
  0x33   :  { %1054 = vmatmul.mubr.msk.f32.gmra.mxu0 %vm78_vm0, %v50_v23 }
  0x34   :  { %1056 = vmatprep.mubr.msk.f32.mxu0 %vm78_vm0, %v51_v24 }
  0x37   :  { %1057 = vmatmul.mubr.msk.f32.gmra.mxu0 %vm78_vm0, %v52_v25 }
  0x38   :  { %1059 = vmatprep.mubr.msk.f32.mxu0 %vm78_vm0, %v53_v26 }
  0x3b   :  { %1060 = vmatmul.mubr.msk.f32.gmra.mxu0 %vm78_vm0, %v54_v27 }
  0x3c   :  { %1062 = vmatprep.mubr.msk.f32.mxu0 %vm78_vm0, %v55_v28 }
  0x3f   :  { %1063 = vmatmul.mubr.msk.f32.gmra.mxu0 %vm78_vm0, %v56_v29 }
  0x40   :  { %1065 = vmatprep.mubr.msk.f32.mxu0 %vm78_vm0, %v57_v30 }
  0x43   :  { %1066 = vmatmul.mubr.msk.f32.gmra.mxu0 %vm78_vm0, %v58_v31 }
  0x44   :  { %1068 = vmatprep.mubr.msk.f32.mxu0 %vm78_vm0, %v59_v32 }
  0x47   :  { %1069 = vmatmul.mubr.msk.f32.gmra.mxu0 %vm78_vm0, %v60_v33 }
  0x48   :  { %1071 = vmatprep.mubr.msk.f32.mxu0 %vm78_vm0, %v61_v34 }
  0x4b   :  { %1072 = vmatmul.mubr.msk.f32.gmra.mxu0 %vm78_vm0, %v62_v35 }
  0x4c   :  { %1074 = vmatprep.mubr.msk.f32.mxu0 %vm78_vm0, %v63_v36 }
  0x4f   :  { %1075 = vmatmul.mubr.msk.f32.gmra.mxu0 %vm78_vm0, %v64_v37 }
  0x50   :  { %1077 = vmatprep.mubr.msk.f32.mxu0 %vm78_vm0, %v65_v38 }
  0x53   :  { %1078 = vmatmul.mubr.msk.f32.gmra.mxu0 %vm78_vm0, %v66_v39 }
  0xd7   :  { %v1034_v45 = vpop.f32.mrf.mxu0 }
  0xd8   :  { %v247_v46 = vadd.f32 %v1034_v45, %v1319_v44 }
  0xd9   :  { %v241_v47 = vpop.f32.mrf.mxu0 }
  0xda   :  { %v242_v48 = vadd.f32 %v1319_v44, %v241_v47  ;;  %v433_v49 = vmul.f32 0.01, %v247_v46  ;;  %vm401_vm2 = vcmp.ge.f32.partialorder %v247_v46, 0.0 }
  0xdb   :  { %v1037_v50 = vpop.f32.mrf.mxu0 }
  0xdc   :  { %vm400_vm3 = vcmp.ge.f32.partialorder %v242_v48, 0.0  ;;  %v432_v51 = vmul.f32 0.01, %v242_v48  ;;  %v257_v52 = vadd.f32 %v1037_v50, %v1319_v44  ;;  %v465_v56 = vsel %vm401_vm2, %v247_v46, %v433_v49 }
  0xdd   :  { %v251_v53 = vpop.f32.mrf.mxu0 }
  0xde   :  { %v252_v54 = vadd.f32 %v1319_v44, %v251_v53  ;;  %v464_v55 = vsel %vm400_vm3, %v242_v48, %v432_v51  ;;  %v435_v57 = vmul.f32 0.01, %v257_v52  ;;  %vm403_vm4 = vcmp.ge.f32.partialorder %v257_v52, 0.0 }
  0xdf   :  { %v1040_v58 = vpop.f32.mrf.mxu0  ;;  %1096 = vmatprep.mubr.msk.f32.mxu0 %vm511_vm1, %v464_v55 }
  0xe0   :  { %v267_v59 = vadd.f32 %v1040_v58, %v1319_v44  ;;  %1097 = vmatmul.mubr.msk.f32.vlgmr.msra.gmra.mxu0 %vm511_vm1, %v465_v56  ;;  %vm402_vm5 = vcmp.ge.f32.partialorder %v252_v54, 0.0  ;;  %v434_v60 = vmul.f32 0.01, %v252_v54  ;;  %v467_v2 = vsel %vm403_vm4, %v257_v52, %v435_v57 }
  0xe1   :  { %v261_v61 = vpop.f32.mrf.mxu0 }
  0xe2   :  { %v262_v62 = vadd.f32 %v1319_v44, %v261_v61  ;;  %v466_v63 = vsel %vm402_vm5, %v252_v54, %v434_v60  ;;  %v437_v0 = vmul.f32 0.01, %v267_v59  ;;  %vm405_vm6 = vcmp.ge.f32.partialorder %v267_v59, 0.0 }
  0xe3   :  { %v1043_v1 = vpop.f32.mrf.mxu0  ;;  %1099 = vmatprep.mubr.msk.f32.mxu1 %vm511_vm1, %v466_v63 }
  0xe4   :  { %vm404_vm7 = vcmp.ge.f32.partialorder %v262_v62, 0.0  ;;  %v436_v3 = vmul.f32 0.01, %v262_v62  ;;  %v277_v4 = vadd.f32 %v1043_v1, %v1319_v44  ;;  %1100 = vmatmul.mubr.msk.f32.vlgmr.msra.gmra.mxu1 %vm511_vm1, %v467_v2  ;;  %v469_v10 = vsel %vm405_vm6, %v267_v59, %v437_v0 }
  0xe5   :  { %v271_v5 = vpop.f32.mrf.mxu0 }
  0xe6   :  { %v272_v6 = vadd.f32 %v1319_v44, %v271_v5  ;;  %v468_v7 = vsel %vm404_vm7, %v262_v62, %v436_v3  ;;  %v439_v8 = vmul.f32 0.01, %v277_v4  ;;  %vm407_vm8 = vcmp.ge.f32.partialorder %v277_v4, 0.0 }
  0xe7   :  { %v1046_v9 = vpop.f32.mrf.mxu0  ;;  %1102 = vmatprep.mubr.msk.f32.mxu1 %vm511_vm1, %v468_v7 }
  0xe8   :  { %vm406_vm9 = vcmp.ge.f32.partialorder %v272_v6, 0.0  ;;  %v438_v11 = vmul.f32 0.01, %v272_v6  ;;  %v287_v12 = vadd.f32 %v1046_v9, %v1319_v44  ;;  %1103 = vmatmul.mubr.msk.f32.gmra.mxu1 %vm511_vm1, %v469_v10  ;;  %v471_v18 = vsel %vm407_vm8, %v277_v4, %v439_v8 }
  0xe9   :  { %v281_v13 = vpop.f32.mrf.mxu0 }
  0xea   :  { %v282_v14 = vadd.f32 %v1319_v44, %v281_v13  ;;  %v470_v15 = vsel %vm406_vm9, %v272_v6, %v438_v11  ;;  %v441_v16 = vmul.f32 0.01, %v287_v12  ;;  %vm409_vm10 = vcmp.ge.f32.partialorder %v287_v12, 0.0 }
  0xeb   :  { %v1049_v17 = vpop.f32.mrf.mxu0  ;;  %1105 = vmatprep.mubr.msk.f32.mxu1 %vm511_vm1, %v470_v15 }
  0xec   :  { %vm408_vm11 = vcmp.ge.f32.partialorder %v282_v14, 0.0  ;;  %v440_v19 = vmul.f32 0.01, %v282_v14  ;;  %v297_v20 = vadd.f32 %v1049_v17, %v1319_v44  ;;  %1106 = vmatmul.mubr.msk.f32.gmra.mxu1 %vm511_vm1, %v471_v18  ;;  %v473_v26 = vsel %vm409_vm10, %v287_v12, %v441_v16 }
  0xed   :  { %v291_v21 = vpop.f32.mrf.mxu0 }
  0xee   :  { %v292_v22 = vadd.f32 %v1319_v44, %v291_v21  ;;  %v472_v23 = vsel %vm408_vm11, %v282_v14, %v440_v19  ;;  %v443_v24 = vmul.f32 0.01, %v297_v20  ;;  %vm411_vm12 = vcmp.ge.f32.partialorder %v297_v20, 0.0 }
  0xef   :  { %v1052_v25 = vpop.f32.mrf.mxu0  ;;  %1108 = vmatprep.mubr.msk.f32.mxu1 %vm511_vm1, %v472_v23 }
  0xf0   :  { %vm410_vm13 = vcmp.ge.f32.partialorder %v292_v22, 0.0  ;;  %v442_v27 = vmul.f32 0.01, %v292_v22  ;;  %v307_v28 = vadd.f32 %v1052_v25, %v1319_v44  ;;  %1109 = vmatmul.mubr.msk.f32.gmra.mxu1 %vm511_vm1, %v473_v26  ;;  %v475_v34 = vsel %vm411_vm12, %v297_v20, %v443_v24 }
  0xf1   :  { %v301_v29 = vpop.f32.mrf.mxu0 }
  0xf2   :  { %v302_v30 = vadd.f32 %v1319_v44, %v301_v29  ;;  %v474_v31 = vsel %vm410_vm13, %v292_v22, %v442_v27  ;;  %v445_v32 = vmul.f32 0.01, %v307_v28  ;;  %vm413_vm14 = vcmp.ge.f32.partialorder %v307_v28, 0.0 }
  0xf3   :  { %v1055_v33 = vpop.f32.mrf.mxu0  ;;  %1111 = vmatprep.mubr.msk.f32.mxu1 %vm511_vm1, %v474_v31 }
  0xf4   :  { %vm412_vm15 = vcmp.ge.f32.partialorder %v302_v30, 0.0  ;;  %v444_v35 = vmul.f32 0.01, %v302_v30  ;;  %v317_v36 = vadd.f32 %v1055_v33, %v1319_v44  ;;  %1112 = vmatmul.mubr.msk.f32.gmra.mxu1 %vm511_vm1, %v475_v34  ;;  %v477_v42 = vsel %vm413_vm14, %v307_v28, %v445_v32 }
  0xf5   :  { %v311_v37 = vpop.f32.mrf.mxu0 }
  0xf6   :  { %v312_v38 = vadd.f32 %v1319_v44, %v311_v37  ;;  %v476_v39 = vsel %vm412_vm15, %v302_v30, %v444_v35  ;;  %v447_v40 = vmul.f32 0.01, %v317_v36  ;;  %vm415_vm2 = vcmp.ge.f32.partialorder %v317_v36, 0.0 }
  0xf7   :  { %v1058_v41 = vpop.f32.mrf.mxu0  ;;  %1114 = vmatprep.mubr.msk.f32.mxu1 %vm511_vm1, %v476_v39 }
  0xf8   :  { %vm414_vm3 = vcmp.ge.f32.partialorder %v312_v38, 0.0  ;;  %v446_v43 = vmul.f32 0.01, %v312_v38  ;;  %v327_v45 = vadd.f32 %v1058_v41, %v1319_v44  ;;  %1115 = vmatmul.mubr.msk.f32.gmra.mxu1 %vm511_vm1, %v477_v42  ;;  %v479_v51 = vsel %vm415_vm2, %v317_v36, %v447_v40 }
  0xf9   :  { %v321_v46 = vpop.f32.mrf.mxu0 }
  0xfa   :  { %v322_v47 = vadd.f32 %v1319_v44, %v321_v46  ;;  %v478_v48 = vsel %vm414_vm3, %v312_v38, %v446_v43  ;;  %v449_v49 = vmul.f32 0.01, %v327_v45  ;;  %vm417_vm4 = vcmp.ge.f32.partialorder %v327_v45, 0.0 }
  0xfb   :  { %v1061_v50 = vpop.f32.mrf.mxu0  ;;  %1117 = vmatprep.mubr.msk.f32.mxu1 %vm511_vm1, %v478_v48 }
  0xfc   :  { %vm416_vm5 = vcmp.ge.f32.partialorder %v322_v47, 0.0  ;;  %v448_v52 = vmul.f32 0.01, %v322_v47  ;;  %v337_v53 = vadd.f32 %v1061_v50, %v1319_v44  ;;  %1118 = vmatmul.mubr.msk.f32.gmra.mxu1 %vm511_vm1, %v479_v51  ;;  %v481_v59 = vsel %vm417_vm4, %v327_v45, %v449_v49 }
  0xfd   :  { %v331_v54 = vpop.f32.mrf.mxu0 }
  0xfe   :  { %v332_v55 = vadd.f32 %v1319_v44, %v331_v54  ;;  %v480_v56 = vsel %vm416_vm5, %v322_v47, %v448_v52  ;;  %v451_v57 = vmul.f32 0.01, %v337_v53  ;;  %vm419_vm6 = vcmp.ge.f32.partialorder %v337_v53, 0.0 }
  0xff   :  { %v1064_v58 = vpop.f32.mrf.mxu0  ;;  %1120 = vmatprep.mubr.msk.f32.mxu1 %vm511_vm1, %v480_v56 }
 0x100   :  { %vm418_vm7 = vcmp.ge.f32.partialorder %v332_v55, 0.0  ;;  %v450_v60 = vmul.f32 0.01, %v332_v55  ;;  %v347_v61 = vadd.f32 %v1064_v58, %v1319_v44  ;;  %1121 = vmatmul.mubr.msk.f32.gmra.mxu1 %vm511_vm1, %v481_v59  ;;  %v483_v3 = vsel %vm419_vm6, %v337_v53, %v451_v57 }
 0x101   :  { %v341_v62 = vpop.f32.mrf.mxu0 }
 0x102   :  { %v342_v63 = vadd.f32 %v1319_v44, %v341_v62  ;;  %v482_v0 = vsel %vm418_vm7, %v332_v55, %v450_v60  ;;  %v453_v1 = vmul.f32 0.01, %v347_v61  ;;  %vm421_vm8 = vcmp.ge.f32.partialorder %v347_v61, 0.0 }
 0x103   :  { %v1067_v2 = vpop.f32.mrf.mxu0  ;;  %1123 = vmatprep.mubr.msk.f32.mxu1 %vm511_vm1, %v482_v0 }
 0x104   :  { %vm420_vm9 = vcmp.ge.f32.partialorder %v342_v63, 0.0  ;;  %v452_v4 = vmul.f32 0.01, %v342_v63  ;;  %v357_v5 = vadd.f32 %v1067_v2, %v1319_v44  ;;  %1124 = vmatmul.mubr.msk.f32.gmra.mxu1 %vm511_vm1, %v483_v3  ;;  %v485_v11 = vsel %vm421_vm8, %v347_v61, %v453_v1 }
 0x105   :  { %v351_v6 = vpop.f32.mrf.mxu0 }
 0x106   :  { %v352_v7 = vadd.f32 %v1319_v44, %v351_v6  ;;  %v484_v8 = vsel %vm420_vm9, %v342_v63, %v452_v4  ;;  %v455_v9 = vmul.f32 0.01, %v357_v5  ;;  %vm423_vm10 = vcmp.ge.f32.partialorder %v357_v5, 0.0 }
 0x107   :  { %v1070_v10 = vpop.f32.mrf.mxu0  ;;  %1126 = vmatprep.mubr.msk.f32.mxu1 %vm511_vm1, %v484_v8 }
 0x108   :  { %vm422_vm11 = vcmp.ge.f32.partialorder %v352_v7, 0.0  ;;  %v454_v12 = vmul.f32 0.01, %v352_v7  ;;  %v367_v13 = vadd.f32 %v1070_v10, %v1319_v44  ;;  %1127 = vmatmul.mubr.msk.f32.gmra.mxu1 %vm511_vm1, %v485_v11  ;;  %v487_v19 = vsel %vm423_vm10, %v357_v5, %v455_v9 }
 0x109   :  { %v361_v14 = vpop.f32.mrf.mxu0 }
 0x10a   :  { %v362_v15 = vadd.f32 %v1319_v44, %v361_v14  ;;  %v486_v16 = vsel %vm422_vm11, %v352_v7, %v454_v12  ;;  %v457_v17 = vmul.f32 0.01, %v367_v13  ;;  %vm425_vm12 = vcmp.ge.f32.partialorder %v367_v13, 0.0 }
 0x10b   :  { %v1073_v18 = vpop.f32.mrf.mxu0  ;;  %1129 = vmatprep.mubr.msk.f32.mxu1 %vm511_vm1, %v486_v16 }
 0x10c   :  { %vm424_vm13 = vcmp.ge.f32.partialorder %v362_v15, 0.0  ;;  %v456_v20 = vmul.f32 0.01, %v362_v15  ;;  %v377_v21 = vadd.f32 %v1073_v18, %v1319_v44  ;;  %1130 = vmatmul.mubr.msk.f32.gmra.mxu1 %vm511_vm1, %v487_v19  ;;  %v489_v27 = vsel %vm425_vm12, %v367_v13, %v457_v17 }
 0x10d   :  { %v371_v22 = vpop.f32.mrf.mxu0 }
 0x10e   :  { %v372_v23 = vadd.f32 %v1319_v44, %v371_v22  ;;  %v488_v24 = vsel %vm424_vm13, %v362_v15, %v456_v20  ;;  %v459_v25 = vmul.f32 0.01, %v377_v21  ;;  %vm427_vm14 = vcmp.ge.f32.partialorder %v377_v21, 0.0 }
 0x10f   :  { %v1076_v26 = vpop.f32.mrf.mxu0  ;;  %1132 = vmatprep.mubr.msk.f32.mxu1 %vm511_vm1, %v488_v24 }
 0x110   :  { %vm426_vm15 = vcmp.ge.f32.partialorder %v372_v23, 0.0  ;;  %v458_v28 = vmul.f32 0.01, %v372_v23  ;;  %v387_v29 = vadd.f32 %v1076_v26, %v1319_v44  ;;  %1133 = vmatmul.mubr.msk.f32.gmra.mxu1 %vm511_vm1, %v489_v27  ;;  %v491_v35 = vsel %vm427_vm14, %v377_v21, %v459_v25 }
 0x111   :  { %v381_v30 = vpop.f32.mrf.mxu0 }
 0x112   :  { %v382_v31 = vadd.f32 %v1319_v44, %v381_v30  ;;  %v490_v32 = vsel %vm426_vm15, %v372_v23, %v458_v28  ;;  %v461_v33 = vmul.f32 0.01, %v387_v29  ;;  %vm429_vm2 = vcmp.ge.f32.partialorder %v387_v29, 0.0 }
 0x113   :  { %v1079_v34 = vpop.f32.mrf.mxu0  ;;  %1135 = vmatprep.mubr.msk.f32.mxu1 %vm511_vm1, %v490_v32 }
 0x114   :  { %vm428_vm3 = vcmp.ge.f32.partialorder %v382_v31, 0.0  ;;  %v460_v36 = vmul.f32 0.01, %v382_v31  ;;  %v397_v37 = vadd.f32 %v1079_v34, %v1319_v44  ;;  %1136 = vmatmul.mubr.msk.f32.gmra.mxu1 %vm511_vm1, %v491_v35  ;;  %v493_v42 = vsel %vm429_vm2, %v387_v29, %v461_v33 }
 0x115   :  { %v391_v38 = vpop.f32.mrf.mxu0 }
 0x116   :  { %v392_v39 = vadd.f32 %v1319_v44, %v391_v38  ;;  %v492_v40 = vsel %vm428_vm3, %v382_v31, %v460_v36  ;;  %v463_v41 = vmul.f32 0.01, %v397_v37  ;;  %vm431_vm4 = vcmp.ge.f32.partialorder %v397_v37, 0.0  ;;  %v1388_v44 = vld [vmem:[%s1464_s4] ss:$0 sm:$0xff]  ;;  %s1211_s4 = smov [#allocation5]  }
 0x117   :  { %1138 = vmatprep.mubr.msk.f32.mxu1 %vm511_vm1, %v492_v40  ;;  %s870_s26 = sshll.u32 %s1211_s4, 4  ;;  %s871_s26 = int_to_ptr.vmem [resolvable:$true] %s870_s26 }
 0x118   :  { %vm430_vm5 = vcmp.ge.f32.partialorder %v392_v39, 0.0  ;;  %v462_v43 = vmul.f32 0.01, %v392_v39  ;;  %1139 = vmatmul.mubr.msk.f32.gmra.mxu1 %vm511_vm1, %v493_v42  ;;  %v495_v46 = vsel %vm431_vm4, %v397_v37, %v463_v41  ;;  %s1184_s27 = scalar_lea.vmem %s871_s26, 4096  ;;  %p1189_p6 = scmp.lt.s32.totalorder %s871_s26, %s871_s26 }
 0x119   :  { %p1185_p5 = scmp.ne.s32.totalorder %s871_s26, %s1184_s27  ;;  %p1190_p7 = scmp.lt.s32.totalorder %s1184_s27, %s1184_s27 }
 0x11a   :  { %v494_v45 = vsel %vm430_vm5, %v392_v39, %v462_v43 }
 0x11b   :  { %1141 = vmatprep.mubr.msk.f32.mxu1 %vm511_vm1, %v494_v45  ;;  %p1191_p8 = por %p1190_p7, %p1189_p6 }
 0x11c   :  { %1142 = vmatmul.mubr.msk.f32.gmra.mxu1 %vm511_vm1, %v495_v46 }
 0x11d   :  { %p1192_p9 = pnand %p1191_p8, %p1185_p5 }
 0x1a0   :  { %v1098_v47 = vpop.f32.mrf.mxu0 }
 0x1a1   :  { %v680_v48 = vadd.f32 %v1098_v47, %v1388_v44 }
 0x1a2   :  { %v674_v49 = vpop.f32.mrf.mxu0 }
 0x1a3   :  { %834 = vst.msk [vmem:[#allocation5 + $0x8] sm:$0xff] %vm78_vm0, %v680_v48  ;;  %v675_v50 = vadd.f32 %v1388_v44, %v674_v49 }
 0x1a4   :  { %v1101_v51 = vpop.f32.mrf.mxu1 }
 0x1a5   :  { %833 = vst.msk [vmem:[#allocation5] sm:$0xff] %vm78_vm0, %v675_v50  ;;  %v690_v52 = vadd.f32 %v1101_v51, %v1388_v44 }
 0x1a6   :  { %v684_v53 = vpop.f32.mrf.mxu1 }
 0x1a7   :  { %836 = vst.msk [vmem:[#allocation5 + $0x18] sm:$0xff] %vm78_vm0, %v690_v52  ;;  %v685_v54 = vadd.f32 %v1388_v44, %v684_v53 }
 0x1a8   :  { %v1104_v55 = vpop.f32.mrf.mxu1 }
 0x1a9   :  { %835 = vst.msk [vmem:[#allocation5 + $0x10] sm:$0xff] %vm78_vm0, %v685_v54  ;;  %v700_v56 = vadd.f32 %v1104_v55, %v1388_v44 }
 0x1aa   :  { %v694_v57 = vpop.f32.mrf.mxu1 }
 0x1ab   :  { %838 = vst.msk [vmem:[#allocation5 + $0x28] sm:$0xff] %vm78_vm0, %v700_v56  ;;  %v695_v58 = vadd.f32 %v1388_v44, %v694_v57 }
 0x1ac   :  { %v1107_v59 = vpop.f32.mrf.mxu1 }
 0x1ad   :  { %837 = vst.msk [vmem:[#allocation5 + $0x20] sm:$0xff] %vm78_vm0, %v695_v58  ;;  %v710_v60 = vadd.f32 %v1107_v59, %v1388_v44 }
 0x1ae   :  { %v704_v61 = vpop.f32.mrf.mxu1 }
 0x1af   :  { %840 = vst.msk [vmem:[#allocation5 + $0x38] sm:$0xff] %vm78_vm0, %v710_v60  ;;  %v705_v62 = vadd.f32 %v1388_v44, %v704_v61 }
 0x1b0   :  { %v1110_v63 = vpop.f32.mrf.mxu1 }
 0x1b1   :  { %839 = vst.msk [vmem:[#allocation5 + $0x30] sm:$0xff] %vm78_vm0, %v705_v62  ;;  %v720_v0 = vadd.f32 %v1110_v63, %v1388_v44 }
 0x1b2   :  { %v714_v1 = vpop.f32.mrf.mxu1 }
 0x1b3   :  { %842 = vst.msk [vmem:[#allocation5 + $0x48] sm:$0xff] %vm78_vm0, %v720_v0  ;;  %v715_v2 = vadd.f32 %v1388_v44, %v714_v1 }
 0x1b4   :  { %v1113_v3 = vpop.f32.mrf.mxu1 }
 0x1b5   :  { %841 = vst.msk [vmem:[#allocation5 + $0x40] sm:$0xff] %vm78_vm0, %v715_v2  ;;  %v730_v4 = vadd.f32 %v1113_v3, %v1388_v44 }
 0x1b6   :  { %v724_v5 = vpop.f32.mrf.mxu1 }
 0x1b7   :  { %844 = vst.msk [vmem:[#allocation5 + $0x58] sm:$0xff] %vm78_vm0, %v730_v4  ;;  %v725_v6 = vadd.f32 %v1388_v44, %v724_v5 }
 0x1b8   :  { %v1116_v7 = vpop.f32.mrf.mxu1 }
 0x1b9   :  { %843 = vst.msk [vmem:[#allocation5 + $0x50] sm:$0xff] %vm78_vm0, %v725_v6  ;;  %v740_v8 = vadd.f32 %v1116_v7, %v1388_v44 }
 0x1ba   :  { %v734_v9 = vpop.f32.mrf.mxu1 }
 0x1bb   :  { %846 = vst.msk [vmem:[#allocation5 + $0x68] sm:$0xff] %vm78_vm0, %v740_v8  ;;  %v735_v10 = vadd.f32 %v1388_v44, %v734_v9 }
 0x1bc   :  { %v1119_v11 = vpop.f32.mrf.mxu1 }
 0x1bd   :  { %845 = vst.msk [vmem:[#allocation5 + $0x60] sm:$0xff] %vm78_vm0, %v735_v10  ;;  %v750_v12 = vadd.f32 %v1119_v11, %v1388_v44 }
 0x1be   :  { %v744_v13 = vpop.f32.mrf.mxu1 }
 0x1bf   :  { %848 = vst.msk [vmem:[#allocation5 + $0x78] sm:$0xff] %vm78_vm0, %v750_v12  ;;  %v745_v14 = vadd.f32 %v1388_v44, %v744_v13 }
 0x1c0   :  { %v1122_v15 = vpop.f32.mrf.mxu1 }
 0x1c1   :  { %847 = vst.msk [vmem:[#allocation5 + $0x70] sm:$0xff] %vm78_vm0, %v745_v14  ;;  %v760_v16 = vadd.f32 %v1122_v15, %v1388_v44 }
 0x1c2   :  { %v754_v17 = vpop.f32.mrf.mxu1 }
 0x1c3   :  { %850 = vst.msk [vmem:[#allocation5 + $0x88] sm:$0xff] %vm78_vm0, %v760_v16  ;;  %v755_v18 = vadd.f32 %v1388_v44, %v754_v17 }
 0x1c4   :  { %v1125_v19 = vpop.f32.mrf.mxu1 }
 0x1c5   :  { %849 = vst.msk [vmem:[#allocation5 + $0x80] sm:$0xff] %vm78_vm0, %v755_v18  ;;  %v770_v20 = vadd.f32 %v1125_v19, %v1388_v44 }
 0x1c6   :  { %v764_v21 = vpop.f32.mrf.mxu1 }
 0x1c7   :  { %852 = vst.msk [vmem:[#allocation5 + $0x98] sm:$0xff] %vm78_vm0, %v770_v20  ;;  %v765_v22 = vadd.f32 %v1388_v44, %v764_v21 }
 0x1c8   :  { %v1128_v23 = vpop.f32.mrf.mxu1 }
 0x1c9   :  { %851 = vst.msk [vmem:[#allocation5 + $0x90] sm:$0xff] %vm78_vm0, %v765_v22  ;;  %v780_v24 = vadd.f32 %v1128_v23, %v1388_v44 }
 0x1ca   :  { %v774_v25 = vpop.f32.mrf.mxu1 }
 0x1cb   :  { %854 = vst.msk [vmem:[#allocation5 + $0xa8] sm:$0xff] %vm78_vm0, %v780_v24  ;;  %v775_v26 = vadd.f32 %v1388_v44, %v774_v25 }
 0x1cc   :  { %v1131_v27 = vpop.f32.mrf.mxu1 }
 0x1cd   :  { %853 = vst.msk [vmem:[#allocation5 + $0xa0] sm:$0xff] %vm78_vm0, %v775_v26  ;;  %v790_v28 = vadd.f32 %v1131_v27, %v1388_v44 }
 0x1ce   :  { %v784_v29 = vpop.f32.mrf.mxu1 }
 0x1cf   :  { %856 = vst.msk [vmem:[#allocation5 + $0xb8] sm:$0xff] %vm78_vm0, %v790_v28  ;;  %v785_v30 = vadd.f32 %v1388_v44, %v784_v29 }
 0x1d0   :  { %v1134_v31 = vpop.f32.mrf.mxu1 }
 0x1d1   :  { %855 = vst.msk [vmem:[#allocation5 + $0xb0] sm:$0xff] %vm78_vm0, %v785_v30  ;;  %v800_v32 = vadd.f32 %v1134_v31, %v1388_v44 }
 0x1d2   :  { %v794_v33 = vpop.f32.mrf.mxu1 }
 0x1d3   :  { %858 = vst.msk [vmem:[#allocation5 + $0xc8] sm:$0xff] %vm78_vm0, %v800_v32  ;;  %v795_v34 = vadd.f32 %v1388_v44, %v794_v33 }
 0x1d4   :  { %v1137_v35 = vpop.f32.mrf.mxu1 }
 0x1d5   :  { %857 = vst.msk [vmem:[#allocation5 + $0xc0] sm:$0xff] %vm78_vm0, %v795_v34  ;;  %v810_v36 = vadd.f32 %v1137_v35, %v1388_v44 }
 0x1d6   :  { %v804_v37 = vpop.f32.mrf.mxu1 }
 0x1d7   :  { %860 = vst.msk [vmem:[#allocation5 + $0xd8] sm:$0xff] %vm78_vm0, %v810_v36  ;;  %v805_v38 = vadd.f32 %v1388_v44, %v804_v37 }
 0x1d8   :  { %v1140_v39 = vpop.f32.mrf.mxu1 }
 0x1d9   :  { %859 = vst.msk [vmem:[#allocation5 + $0xd0] sm:$0xff] %vm78_vm0, %v805_v38  ;;  %v820_v40 = vadd.f32 %v1140_v39, %v1388_v44 }
 0x1da   :  { %v814_v41 = vpop.f32.mrf.mxu1 }
 0x1db   :  { %862 = vst.msk [vmem:[#allocation5 + $0xe8] sm:$0xff] %vm78_vm0, %v820_v40  ;;  %v815_v42 = vadd.f32 %v1388_v44, %v814_v41 }
 0x1dc   :  { %v1143_v43 = vpop.f32.mrf.mxu1 }
 0x1dd   :  { %861 = vst.msk [vmem:[#allocation5 + $0xe0] sm:$0xff] %vm78_vm0, %v815_v42  ;;  %v830_v45 = vadd.f32 %v1143_v43, %v1388_v44 }
 0x1de   :  { %v824_v46 = vpop.f32.mrf.mxu1 }
 0x1df   :  { %864 = vst.msk [vmem:[#allocation5 + $0xf8] sm:$0xff] %vm78_vm0, %v830_v45  ;;  %v825_v47 = vadd.f32 %v1388_v44, %v824_v46 }
 0x1e1   :  { %863 = vst.msk [vmem:[#allocation5 + $0xf0] sm:$0xff] %vm78_vm0, %v825_v47 }
 0x1e2   :  { %1195 = shalt.err (!%p1192_p9)
}
 0x1e3   :  { %876 = dma.vmem_to_hbm [thread:$0]  %s871_s26, 4096, %s1465_s5, [#allocation4], %s1209_s21, %s1209_s21, %s1210_s22  }
 0x1e4   :  { %1206 = dma.done.wait [#allocation4], 4096  }
 0x1e5   :  { %1207 = vsyncadd [#allocation4], 4294963200 }
 0x1e6   :  { %880 = vsyncpa [#allocation3], 1 }
 0x1e7   :  { %881 = vsyncpa [#allocation4], 1 }

</bundles_post_ra>
